<compile_context>
chip_gen: v7x
topology: tpu7x:2x2x1
jax: 0.10.0
libtpu: 0.0.40
codegen_flags: <defaults>
</compile_context>

<pallas_src>
import jax
import jax.numpy as jnp
from jax.experimental import pallas as pl
from jax.experimental.pallas import tpu as pltpu


def _round_up(n, m):
    return ((n + m - 1) // m) * m


def _song_encoder_kernel(x_ref, w1_ref, b1_ref, w2_ref, b2_ref, out_ref):
    # Hot path: two MXU matmuls + bias adds + ReLU, all fused in VMEM.
    x = x_ref[...]                                               # (TM, D_in)
    h = jnp.dot(x, w1_ref[...], preferred_element_type=jnp.float32)
    h = jnp.maximum(h + b1_ref[...], 0.0)                        # (TM, 256) + (1, 256)
    o = jnp.dot(h.astype(w2_ref.dtype), w2_ref[...],
                preferred_element_type=jnp.float32)
    out_ref[...] = (o + b2_ref[...]).astype(out_ref.dtype)       # (TM, E) + (1, E)


def song_encoder_forward(x, w1, b1, w2, b2, *, block_m=256):
    """x: (B, input_dim) f32 -> (B, embed_dim) f32.

    block_m: max rows per batch tile. 256 fills the v6e/v7x MXU (2x256^2) and
    is a multiple of 128 (v5e MXU). Per-tile working set (x tile + hidden +
    out tile + resident weights) is a few hundred KiB — far under every
    generation's scoped-VMEM default, so no vmem_limit override is needed.
    """
    B, d_in = x.shape
    hidden = w1.shape[1]
    embed = w2.shape[1]

    # Biases as (1, N) rows -> single broadcasted VPU add in-kernel.
    b1_2d = b1.reshape(1, hidden)
    b2_2d = b2.reshape(1, embed)

    # Effective tile: at most block_m rows, at least 8 (sublane), multiple of 8.
    tm = min(block_m, _round_up(B, 8))
    b_pad = _round_up(B, tm)
    if b_pad != B:
        # Pad ragged batch so every tile/store is full-size and unmasked.
        x = jnp.pad(x, ((0, b_pad - B), (0, 0)))

    grid = (b_pad // tm,)

    out = pl.pallas_call(
        _song_encoder_kernel,
        out_shape=jax.ShapeDtypeStruct((b_pad, embed), jnp.float32),
        grid_spec=pl.GridSpec(
            grid=grid,
            in_specs=[
                # x: one batch tile per grid step (pipelined / double-buffered).
                pl.BlockSpec((tm, d_in), lambda i: (i, 0)),
                # Weights & biases: same block every step -> stay VMEM-resident.
                pl.BlockSpec((d_in, hidden), lambda i: (0, 0)),
                pl.BlockSpec((1, hidden), lambda i: (0, 0)),
                pl.BlockSpec((hidden, embed), lambda i: (0, 0)),
                pl.BlockSpec((1, embed), lambda i: (0, 0)),
            ],
            out_specs=pl.BlockSpec((tm, embed), lambda i: (i, 0)),
        ),
        compiler_params=pltpu.CompilerParams(
            # Batch tiles are independent -> parallel (2x TC win on v7x).
            dimension_semantics=("parallel",),
        ),
    )(x, w1, b1_2d, w2, b2_2d)

    return out[:B]


def init_params(key, input_dim, embed_dim=128, hidden=256):
    """Deterministic init mimicking PyTorch Linear default (uniform ±1/sqrt(fan_in))."""
    k1, k2, k3, k4 = jax.random.split(key, 4)
    lim1 = 1.0 / jnp.sqrt(input_dim)
    lim2 = 1.0 / jnp.sqrt(hidden)
    w1 = jax.random.uniform(k1, (input_dim, hidden), jnp.float32, -lim1, lim1)
    b1 = jax.random.uniform(k2, (hidden,), jnp.float32, -lim1, lim1)
    w2 = jax.random.uniform(k3, (hidden, embed_dim), jnp.float32, -lim2, lim2)
    b2 = jax.random.uniform(k4, (embed_dim,), jnp.float32, -lim2, lim2)
    return w1, b1, w2, b2


if __name__ == "__main__":
    key = jax.random.PRNGKey(0)
    kx, kp = jax.random.split(key)

    # Batch chosen so the kernel exercises both tiling (grid > 1) and the
    # ragged-batch padding path (300 -> padded to 512 with TM=256).
    batch = 300
    input_dim = 32
    embed_dim = 128

    x = jax.random.normal(kx, (batch, input_dim), jnp.float32)
    w1, b1, w2, b2 = init_params(kp, input_dim, embed_dim)

    out = song_encoder_forward(x, w1, b1, w2, b2)
    out = jax.block_until_ready(out)

    # Reference check against plain JAX (same math as the PyTorch module).
    ref = jnp.maximum(x @ w1 + b1, 0.0) @ w2 + b2
    assert out.shape == (batch, embed_dim)
    assert jnp.allclose(out, ref, atol=2e-4, rtol=2e-4)

    # TODO(synk): optional bf16 operand cast (keep f32 accumulate) for a
    # further MXU/HBM win on v6e/v7x if accuracy budget allows.
    print("KERNEL_OK")
</pallas_src>

<mosaic_0001>
module attributes {stable_mosaic.version = 11 : i64} {
  func.func @_song_encoder_kernel(%arg0: i32, %arg1: memref<256x32xf32, #tpu.memory_space<vmem>>, %arg2: memref<32x256xf32, #tpu.memory_space<vmem>>, %arg3: memref<1x256xf32, #tpu.memory_space<vmem>>, %arg4: memref<256x128xf32, #tpu.memory_space<vmem>>, %arg5: memref<1x128xf32, #tpu.memory_space<vmem>>, %arg6: memref<256x128xf32, #tpu.memory_space<vmem>>) attributes {dimension_semantics = [#tpu.dimension_semantics<parallel>], iteration_bounds = array<i64: 2>, scalar_prefetch = 0 : i64, scratch_operands = 0 : i64, tpu.core_type = #tpu.core_type<tc>, window_params = [{transform_indices = @transform_0, window_bounds = array<i64: 256, 32>}, {pipeline_mode = #tpu.pipeline_mode<synchronous>, transform_indices = @transform_1, window_bounds = array<i64: 32, 256>}, {pipeline_mode = #tpu.pipeline_mode<synchronous>, transform_indices = @transform_2, window_bounds = array<i64: 1, 256>}, {pipeline_mode = #tpu.pipeline_mode<synchronous>, transform_indices = @transform_3, window_bounds = array<i64: 256, 128>}, {pipeline_mode = #tpu.pipeline_mode<synchronous>, transform_indices = @transform_4, window_bounds = array<i64: 1, 128>}, {transform_indices = @transform_5, window_bounds = array<i64: 256, 128>}]} {
    %c0 = arith.constant 0 : index
    %c0_0 = arith.constant 0 : index
    %0 = vector.load %arg1[%c0, %c0_0] : memref<256x32xf32, #tpu.memory_space<vmem>>, vector<256x32xf32>
    %c0_1 = arith.constant 0 : index
    %c0_2 = arith.constant 0 : index
    %1 = vector.load %arg2[%c0_1, %c0_2] : memref<32x256xf32, #tpu.memory_space<vmem>>, vector<32x256xf32>
    %cst = arith.constant dense<0.000000e+00> : vector<256x256xf32>
    %2 = tpu.matmul %0, %1, %cst {dimension_numbers = #tpu.dot_dimension_numbers<[1], [0], [0], [1], [0, 0, 1, 1], [], []>} : vector<256x32xf32>, vector<32x256xf32>, vector<256x256xf32> -> vector<256x256xf32>
    %c0_3 = arith.constant 0 : index
    %c0_4 = arith.constant 0 : index
    %3 = vector.load %arg3[%c0_3, %c0_4] : memref<1x256xf32, #tpu.memory_space<vmem>>, vector<1x256xf32>
    %4 = vector.broadcast %3 : vector<1x256xf32> to vector<256x256xf32>
    %5 = arith.addf %2, %4 : vector<256x256xf32>
    %cst_5 = arith.constant 0.000000e+00 : f32
    %6 = vector.broadcast %cst_5 : f32 to vector<256x256xf32>
    %7 = arith.maximumf %5, %6 : vector<256x256xf32>
    %c0_6 = arith.constant 0 : index
    %c0_7 = arith.constant 0 : index
    %8 = vector.load %arg4[%c0_6, %c0_7] : memref<256x128xf32, #tpu.memory_space<vmem>>, vector<256x128xf32>
    %cst_8 = arith.constant dense<0.000000e+00> : vector<256x128xf32>
    %9 = tpu.matmul %7, %8, %cst_8 {dimension_numbers = #tpu.dot_dimension_numbers<[1], [0], [0], [1], [0, 0, 1, 1], [], []>} : vector<256x256xf32>, vector<256x128xf32>, vector<256x128xf32> -> vector<256x128xf32>
    %c0_9 = arith.constant 0 : index
    %c0_10 = arith.constant 0 : index
    %10 = vector.load %arg5[%c0_9, %c0_10] : memref<1x128xf32, #tpu.memory_space<vmem>>, vector<1x128xf32>
    %11 = vector.broadcast %10 : vector<1x128xf32> to vector<256x128xf32>
    %12 = arith.addf %9, %11 : vector<256x128xf32>
    %c0_11 = arith.constant 0 : index
    %c0_12 = arith.constant 0 : index
    %13 = vector.load %arg6[%c0_11, %c0_12] : memref<256x128xf32, #tpu.memory_space<vmem>>, vector<256x128xf32>
    tpu.vector_store %arg6[%c0_11, %c0_12], %12 {strides = array<i32>} : memref<256x128xf32, #tpu.memory_space<vmem>>, vector<256x128xf32>,
    return
  }
  func.func @transform_0(%arg0: i32) -> (i32, i32) {
    %c0_i32 = arith.constant 0 : i32
    %c0_i32_0 = arith.constant 0 : i32
    return %arg0, %c0_i32 : i32, i32
  }
  func.func @transform_1(%arg0: i32) -> (i32, i32) {
    %c0_i32 = arith.constant 0 : i32
    %c0_i32_0 = arith.constant 0 : i32
    %c0_i32_1 = arith.constant 0 : i32
    return %c0_i32, %c0_i32_0 : i32, i32
  }
  func.func @transform_2(%arg0: i32) -> (i32, i32) {
    %c0_i32 = arith.constant 0 : i32
    %c0_i32_0 = arith.constant 0 : i32
    %c0_i32_1 = arith.constant 0 : i32
    return %c0_i32, %c0_i32_0 : i32, i32
  }
  func.func @transform_3(%arg0: i32) -> (i32, i32) {
    %c0_i32 = arith.constant 0 : i32
    %c0_i32_0 = arith.constant 0 : i32
    %c0_i32_1 = arith.constant 0 : i32
    return %c0_i32, %c0_i32_0 : i32, i32
  }
  func.func @transform_4(%arg0: i32) -> (i32, i32) {
    %c0_i32 = arith.constant 0 : i32
    %c0_i32_0 = arith.constant 0 : i32
    %c0_i32_1 = arith.constant 0 : i32
    return %c0_i32, %c0_i32_0 : i32, i32
  }
  func.func @transform_5(%arg0: i32) -> (i32, i32) {
    %c0_i32 = arith.constant 0 : i32
    %c0_i32_0 = arith.constant 0 : i32
    return %arg0, %c0_i32 : i32, i32
  }
}

</mosaic_0001>

<bundles_post_ra>
// kernel: tpu_custom_call.1
= control target key start
LH: loop header
LB: loop body
LE: loop exit
PB: predicated region body
PF: predicated region fallthrough
CT: control target
= control target key end

     0   :  { %10 = vsyncpa [#allocation3], 0  ;;  %s1843_s0 = inlined_call_operand.vmem [shape: f32[512,32], index: 0, kind: input, shape index: {}]   ;;  %s1844_s1 = inlined_call_operand.vmem [shape: f32[32,256], index: 1, kind: input, shape index: {}]   ;;  %s1845_s2 = inlined_call_operand.vmem [shape: f32[1,256], index: 2, kind: input, shape index: {}]   ;;  %s1846_s3 = inlined_call_operand.vmem [shape: f32[256,128], index: 3, kind: input, shape index: {}]   ;;  %s1847_s4 = inlined_call_operand.vmem [shape: f32[1,128], index: 4, kind: input, shape index: {}]   ;;  %s1848_s5 = inlined_call_operand.hbm [shape: f32[512,128], index: 5, kind: output, shape index: {}]  }
   0x1   :  { %12 = vsyncpa [#allocation3 + $0x1], 0  ;;  %s1344_s18 = smov 0   ;;  %s1346_s19 = smov 0  }
   0x2   :  { %s1348_s20 = smov 0   ;;  %s1350_s21 = smov 0  }
   0x3 LB: > { %s1365_s22 = sadd.s32 4294967295, %s1307_s21   ;;  %s1068_s23 = sadd.s32 4294967294, %s1307_s21   ;;  %s1307_s21 = sphi %s1350_s21, %s1854_s21   ;;  %s1303_s20 = sphi %s1348_s20, %s1853_s20   ;;  %s1299_s19 = sphi %s1346_s19, %s1852_s19   ;;  %s1295_s18 = sphi %s1344_s18, %s1851_s18  }
   0x4   : > { %s1369_s24 = sadd.s32 1, %s1307_s21   ;;  %s135_s25 = sadd.s32 1, %s1303_s20 }
   0x5   : > { %s132_s26 = ssub.s32 %s1307_s21, %s1369_s24  ;;  %p145_p0 = scmp.ne.s32.totalorder %s1303_s20, %s1299_s19 }
   0x6   : > { %p133_p1 = scmp.eq.s32.totalorder %s132_s26, 0  ;;  %p146_p2 = scmp.eq.s32.totalorder %s1365_s22, 1 }
   0x7   : > { %p151_p3 = scmp.ne.s32.totalorder %s1299_s19, %s1295_s18  ;;  %p152_p4 = scmp.eq.s32.totalorder %s1068_s23, 1 }
   0x8   : > { %s1380_s27 = scalar_select %p133_p1, %s1303_s20, %s135_s25  }
   0x9   : > { %p1382_p5 = por %p146_p2, %p145_p0  ;;  %p1386_p6 = por %p152_p4, %p151_p3 }
   0xa   : > { %p1071_p7 = scmp.ge.s32.totalorder %s1307_s21, 1  ;;  %p191_p8 = scmp.lt.s32.totalorder %s1307_s21, 3 }
   0xc   : > { %p192_p9 = pnand %p1071_p7, %p191_p8 }
   0xd   : > { %v259_v0 = vld [vmem:[%s1844_s1 + $0x8] sm:$0xff] (!%p192_p9)  ;;  %v261_v1 = vld [vmem:[%s1844_s1 + $0x18] sm:$0xff] (!%p192_p9)  ;;  %v258_v2 = vld [vmem:[%s1844_s1] sm:$0xff] (!%p192_p9)  ;;  %s1073_s11 = sshll.u32 (!%p192_p9), %s1365_s22, 5  ;;  %v1309_v7 = vmov (!%p192_p9), 0.0   ;;  %vm278_vm0 = vcmask (!%p192_p9), 261120  }
   0xe   : > { %195 = sbr.rel (%p192_p9) target bundleno = 596 (0x254), region = 40  ;;  %v1114_v3 = vpack.c.bf16 (!%p192_p9), %v261_v1, %v259_v0  ;;  %v260_v4 = vld [vmem:[%s1844_s1 + $0x10] sm:$0xff] (!%p192_p9)  ;;  %v263_v5 = vld [vmem:[%s1844_s1 + $0x28] sm:$0xff] (!%p192_p9)  ;;  %v265_v6 = vld [vmem:[%s1844_s1 + $0x38] sm:$0xff] (!%p192_p9)  ;;  %439 = vmatprep.mubr.f32.mxu0 (!%p192_p9), %v1309_v7  ;;  %p220_p10 = scmp.lt.s32.totalorder (!%p192_p9), %s1073_s11, 63  ;;  %v1310_v14 = vmov (!%p192_p9), 0.0|0.0  }
   0xf   : > { %v1116_v8 = vpack.c.bf16 (!%p192_p9), %v260_v4, %v258_v2  ;;  %v1118_v9 = vpack.c.bf16 (!%p192_p9), %v265_v6, %v263_v5  ;;  %v262_v10 = vld [vmem:[%s1844_s1 + $0x20] sm:$0xff] (!%p192_p9)  ;;  %v264_v11 = vld [vmem:[%s1844_s1 + $0x30] sm:$0xff] (!%p192_p9)  ;;  %1170 = vmatprep.subr.bf16.mxu1 (!%p192_p9), %v1310_v14  ;;  %v697_v18 = vld [vmem:[%s1846_s3 + $0x8] sm:$0xff] (!%p192_p9)  ;;  %s1113_s26 = sshll.u32 (!%p192_p9), %s1365_s22, 12 }
  0x10   : > { %1115 = vmatprep.subr.bf16.mxu0 (!%p192_p9), %v1114_v3  ;;  %v1120_v12 = vpack.c.bf16 (!%p192_p9), %v264_v11, %v262_v10  ;;  %v696_v17 = vld [vmem:[%s1846_s3] sm:$0xff] (!%p192_p9)  ;;  %v698_v19 = vld [vmem:[%s1846_s3 + $0x10] sm:$0xff] (!%p192_p9)  ;;  %v699_v20 = vld [vmem:[%s1846_s3 + $0x18] sm:$0xff] (!%p192_p9)  ;;  %s1794_s8 = scalar_lea.hbm (!%p192_p9), %s1848_s5, %s1113_s26 }
  0x11   : > { %1117 = vmatpush1.bf16.msra.mxu0 (!%p192_p9), %v1116_v8  ;;  %v1123_v21 = vpack.c.bf16 (!%p192_p9), %v697_v18, %v696_v17  ;;  %v1126_v23 = vpack.c.bf16 (!%p192_p9), %v699_v20, %v698_v19  ;;  %v700_v24 = vld [vmem:[%s1846_s3 + $0x20] sm:$0xff] (!%p192_p9)  ;;  %v701_v25 = vld [vmem:[%s1846_s3 + $0x28] sm:$0xff] (!%p192_p9)  ;;  %v702_v28 = vld [vmem:[%s1846_s3 + $0x30] sm:$0xff] (!%p192_p9) }
  0x12   : > { %1119 = vmatprep.subr.bf16.mxu0 (!%p192_p9), %v1118_v9  ;;  %v1129_v27 = vpack.c.bf16 (!%p192_p9), %v701_v25, %v700_v24  ;;  %v703_v29 = vld [vmem:[%s1846_s3 + $0x38] sm:$0xff] (!%p192_p9)  ;;  %v704_v32 = vld [vmem:[%s1846_s3 + $0x40] sm:$0xff] (!%p192_p9)  ;;  %v705_v33 = vld [vmem:[%s1846_s3 + $0x48] sm:$0xff] (!%p192_p9) }
  0x13   : > { %1186 = vmatpush1.bf16.msra.mxu1 (!%p192_p9), %v1123_v21  ;;  %v1132_v31 = vpack.c.bf16 (!%p192_p9), %v703_v29, %v702_v28  ;;  %v1135_v35 = vpack.c.bf16 (!%p192_p9), %v705_v33, %v704_v32  ;;  %v706_v36 = vld [vmem:[%s1846_s3 + $0x50] sm:$0xff] (!%p192_p9)  ;;  %v707_v37 = vld [vmem:[%s1846_s3 + $0x58] sm:$0xff] (!%p192_p9)  ;;  %v708_v40 = vld [vmem:[%s1846_s3 + $0x60] sm:$0xff] (!%p192_p9) }
  0x14   : > { %1171 = vmatprep.subr.bf16.mxu1 (!%p192_p9), %v1310_v14  ;;  %v1138_v39 = vpack.c.bf16 (!%p192_p9), %v707_v37, %v706_v36  ;;  %v709_v41 = vld [vmem:[%s1846_s3 + $0x68] sm:$0xff] (!%p192_p9)  ;;  %v710_v44 = vld [vmem:[%s1846_s3 + $0x70] sm:$0xff] (!%p192_p9)  ;;  %v711_v45 = vld [vmem:[%s1846_s3 + $0x78] sm:$0xff] (!%p192_p9) }
  0x15   : > { %s1856_s11 = smov (!%p220_p10, %s1073_s11), 63  ;;  %1121 = vmatpush1.bf16.msra.mxu0 %v1120_v12  ;;  %v1141_v43 = vpack.c.bf16 %v709_v41, %v708_v40  ;;  %v1144_v47 = vpack.c.bf16 %v711_v45, %v710_v44  ;;  %v712_v48 = vld [vmem:[%s1846_s3 + $0x80] sm:$0xff]  ;;  %v713_v49 = vld [vmem:[%s1846_s3 + $0x88] sm:$0xff]  ;;  %v714_v52 = vld [vmem:[%s1846_s3 + $0x90] sm:$0xff] }
  0x16   : > { %s1074_s6 = sshll.u32 %s1856_s11, 3  ;;  %1122 = vmatprep.subr.bf16.mxu0 %v1310_v14  ;;  %v1147_v51 = vpack.c.bf16 %v713_v49, %v712_v48  ;;  %v715_v53 = vld [vmem:[%s1846_s3 + $0x98] sm:$0xff]  ;;  %v716_v56 = vld [vmem:[%s1846_s3 + $0xa0] sm:$0xff]  ;;  %v717_v57 = vld [vmem:[%s1846_s3 + $0xa8] sm:$0xff]  ;;  %s1311_s11 = smov [#allocation2]  }
  0x17   : > { %s1421_s9 = scalar_lea.vmem %s1843_s0, %s1074_s6  ;;  %1187 = vmatpush1.bf16.msra.mxu1 %v1126_v23  ;;  %v1150_v55 = vpack.c.bf16 %v715_v53, %v714_v52  ;;  %v1153_v59 = vpack.c.bf16 %v717_v57, %v716_v56  ;;  %v718_v60 = vld [vmem:[%s1846_s3 + $0xb0] sm:$0xff]  ;;  %v719_v61 = vld [vmem:[%s1846_s3 + $0xb8] sm:$0xff]  ;;  %v720_v0 = vld [vmem:[%s1846_s3 + $0xc0] sm:$0xff]  ;;  %s1249_s12 = sshll.u32 %s1311_s11, 4  ;;  %s1250_s12 = int_to_ptr.vmem [resolvable:$false] %s1249_s12 }
  0x18   : > { %v226_v13 = vld [vmem:[%s1421_s9] sm:$0xff]  ;;  %v227_v15 = vld [vmem:[%s1421_s9 + $0x8] sm:$0xff]  ;;  %v228_v16 = vld [vmem:[%s1421_s9 + $0x10] sm:$0xff]  ;;  %1172 = vmatprep.subr.bf16.mxu1 %v1310_v14  ;;  %v1156_v63 = vpack.c.bf16 %v719_v61, %v718_v60  ;;  %s1251_s13 = scalar_lea.vmem %s1250_s12, 8192 }
  0x19   : > { %1075 = vmatmul.mubr.msk.f32.vlgmr.msra.gmra.mrb[0].mxu0 %vm278_vm0, %v226_v13  ;;  %v229_v22 = vld [vmem:[%s1421_s9 + $0x18] sm:$0xff]  ;;  %v230_v26 = vld [vmem:[%s1421_s9 + $0x20] sm:$0xff]  ;;  %v231_v30 = vld [vmem:[%s1421_s9 + $0x28] sm:$0xff] }
  0x1a   : > { %445 = vmatprep.mubr.f32.mxu0 %v1309_v7  ;;  %1124 = vmatpush1.bf16.msra.mxu0 %v1123_v21  ;;  %v232_v34 = vld [vmem:[%s1421_s9 + $0x30] sm:$0xff]  ;;  %v233_v38 = vld [vmem:[%s1421_s9 + $0x38] sm:$0xff]  ;;  %v234_v42 = vld [vmem:[%s1421_s9 + $0x40] sm:$0xff] }
  0x1b   : > { %1125 = vmatprep.subr.bf16.mxu0 %v1310_v14  ;;  %1188 = vmatpush1.bf16.msra.mxu1 %v1129_v27  ;;  %v235_v46 = vld [vmem:[%s1421_s9 + $0x48] sm:$0xff]  ;;  %v236_v50 = vld [vmem:[%s1421_s9 + $0x50] sm:$0xff]  ;;  %v237_v54 = vld [vmem:[%s1421_s9 + $0x58] sm:$0xff] }
  0x1c   : > { %1173 = vmatprep.subr.bf16.mxu1 %v1310_v14  ;;  %v238_v58 = vld [vmem:[%s1421_s9 + $0x60] sm:$0xff]  ;;  %v239_v62 = vld [vmem:[%s1421_s9 + $0x68] sm:$0xff]  ;;  %v240_v2 = vld [vmem:[%s1421_s9 + $0x70] sm:$0xff] }
  0x1d   : > { %1076 = vmatmul.mubr.msk.f32.gmra.mrb[2].mxu0 %vm278_vm0, %v227_v15  ;;  %v721_v1 = vld [vmem:[%s1846_s3 + $0xc8] sm:$0xff]  ;;  %v722_v4 = vld [vmem:[%s1846_s3 + $0xd0] sm:$0xff]  ;;  %v723_v5 = vld [vmem:[%s1846_s3 + $0xd8] sm:$0xff] }
  0x1e   : > { %451 = vmatprep.mubr.f32.mxu0 %v1309_v7  ;;  %1127 = vmatpush1.bf16.msra.mxu0 %v1126_v23  ;;  %v1159_v3 = vpack.c.bf16 %v721_v1, %v720_v0  ;;  %v241_v6 = vld [vmem:[%s1421_s9 + $0x78] sm:$0xff]  ;;  %v1162_v8 = vpack.c.bf16 %v723_v5, %v722_v4  ;;  %v242_v9 = vld [vmem:[%s1421_s9 + $0x80] sm:$0xff]  ;;  %v243_v10 = vld [vmem:[%s1421_s9 + $0x88] sm:$0xff] }
  0x1f   : > { %1128 = vmatprep.subr.bf16.mxu0 %v1310_v14  ;;  %1189 = vmatpush1.bf16.msra.mxu1 %v1132_v31  ;;  %v244_v11 = vld [vmem:[%s1421_s9 + $0x90] sm:$0xff]  ;;  %v245_v12 = vld [vmem:[%s1421_s9 + $0x98] sm:$0xff]  ;;  %v246_v13 = vld [vmem:[%s1421_s9 + $0xa0] sm:$0xff] }
  0x20   : > { %1174 = vmatprep.subr.bf16.mxu1 %v1310_v14  ;;  %v724_v15 = vld [vmem:[%s1846_s3 + $0xe0] sm:$0xff]  ;;  %v247_v17 = vld [vmem:[%s1421_s9 + $0xa8] sm:$0xff]  ;;  %v726_v19 = vld [vmem:[%s1846_s3 + $0xf0] sm:$0xff] }
  0x21   : > { %1077 = vmatmul.mubr.msk.f32.gmra.mrb[4].mxu0 %vm278_vm0, %v228_v16  ;;  %v725_v16 = vld [vmem:[%s1846_s3 + $0xe8] sm:$0xff]  ;;  %v727_v20 = vld [vmem:[%s1846_s3 + $0xf8] sm:$0xff]  ;;  %v248_v21 = vld [vmem:[%s1421_s9 + $0xb0] sm:$0xff] }
  0x22   : > { %457 = vmatprep.mubr.f32.mxu0 %v1309_v7  ;;  %1130 = vmatpush1.bf16.msra.mxu0 %v1129_v27  ;;  %v1165_v18 = vpack.c.bf16 %v725_v16, %v724_v15  ;;  %v249_v23 = vld [vmem:[%s1421_s9 + $0xb8] sm:$0xff]  ;;  %v250_v24 = vld [vmem:[%s1421_s9 + $0xc0] sm:$0xff]  ;;  %v252_v25 = vld [vmem:[%s1421_s9 + $0xd0] sm:$0xff] }
  0x23   : > { %1131 = vmatprep.subr.bf16.mxu0 %v1310_v14  ;;  %1190 = vmatpush1.bf16.msra.mxu1 %v1135_v35  ;;  %v254_v27 = vld [vmem:[%s1421_s9 + $0xe0] sm:$0xff]  ;;  %v255_v28 = vld [vmem:[%s1421_s9 + $0xe8] sm:$0xff]  ;;  %v256_v29 = vld [vmem:[%s1421_s9 + $0xf0] sm:$0xff] }
  0x24   : > { %1175 = vmatprep.subr.bf16.mxu1 %v1310_v14 }
  0x25   : > { %1078 = vmatmul.mubr.msk.f32.gmra.mrb[6].mxu0 %vm278_vm0, %v229_v22  ;;  %v1168_v22 = vpack.c.bf16 %v727_v20, %v726_v19 }
  0x26   : > { %463 = vmatprep.mubr.f32.mxu0 %v1309_v7  ;;  %1133 = vmatpush1.bf16.msra.mxu0 %v1132_v31  ;;  %v268_v31 = vlaneseq }
  0x27   : > { %1134 = vmatprep.subr.bf16.mxu0 %v1310_v14  ;;  %1191 = vmatpush1.bf16.msra.mxu1 %v1138_v39 }
  0x28   : > { %1176 = vmatprep.subr.bf16.mxu1 %v1310_v14  ;;  %v269_v32 = vshrl.u32 %v268_v31, 7 }
  0x29   : > { %1079 = vmatmul.mubr.msk.f32.gmra.mrb[8].mxu0 %vm278_vm0, %v230_v26  ;;  %v253_v26 = vld [vmem:[%s1421_s9 + $0xd8] sm:$0xff] }
  0x2a   : > { %469 = vmatprep.mubr.f32.mxu0 %v1309_v7  ;;  %1136 = vmatpush1.bf16.msra.mxu0 %v1135_v35  ;;  %v270_v33 = vsub.s32 0, %v269_v32  ;;  %v274_v35 = vsub.s32 1, %v269_v32 }
  0x2b   : > { %1137 = vmatprep.subr.bf16.mxu0 %v1310_v14  ;;  %1192 = vmatpush1.bf16.msra.mxu1 %v1141_v43 }
  0x2c   : > { %1177 = vmatprep.subr.bf16.mxu1 %v1310_v14 }
  0x2d   : > { %1080 = vmatmul.mubr.msk.f32.gmra.mrb[10].mxu0 %vm278_vm0, %v231_v30  ;;  %v257_v30 = vld [vmem:[%s1421_s9 + $0xf8] sm:$0xff] }
  0x2e   : > { %475 = vmatprep.mubr.f32.mxu0 %v1309_v7  ;;  %1139 = vmatpush1.bf16.msra.mxu0 %v1138_v39 }
  0x2f   : > { %1140 = vmatprep.subr.bf16.mxu0 %v1310_v14  ;;  %1193 = vmatpush1.bf16.msra.mxu1 %v1144_v47 }
  0x30   : > { %1178 = vmatprep.subr.bf16.mxu1 %v1310_v14 }
  0x31   : > { %1081 = vmatmul.mubr.msk.f32.gmra.mrb[12].mxu0 %vm278_vm0, %v232_v34  ;;  %v266_v34 = vld [vmem:[%s1845_s2] sm:$0x3] }
  0x32   : > { %481 = vmatprep.mubr.f32.mxu0 %v1309_v7  ;;  %1142 = vmatpush1.bf16.msra.mxu0 %v1141_v43  ;;  %v1649_v36 = vrot.slane %v266_v34, %v270_v33  ;;  %v1651_v37 = vrot.slane %v266_v34, %v274_v35 }
  0x33   : > { %1143 = vmatprep.subr.bf16.mxu0 %v1310_v14  ;;  %1194 = vmatpush1.bf16.msra.mxu1 %v1147_v51 }
  0x34   : > { %1179 = vmatprep.subr.bf16.mxu1 %v1310_v14 }
  0x35   : > { %1082 = vmatmul.mubr.msk.f32.gmra.mrb[14].mxu0 %vm278_vm0, %v233_v38 }
  0x36   : > { %487 = vmatprep.mubr.f32.mxu0 %v1309_v7  ;;  %1145 = vmatpush1.bf16.msra.mxu0 %v1144_v47 }
  0x37   : > { %1146 = vmatprep.subr.bf16.mxu0 %v1310_v14  ;;  %1195 = vmatpush1.bf16.msra.mxu1 %v1150_v55 }
  0x38   : > { %1180 = vmatprep.subr.bf16.mxu1 %v1310_v14 }
  0x39   : > { %1083 = vmatmul.mubr.msk.f32.gmra.mrb[16].mxu0 %vm278_vm0, %v234_v42 }
  0x3a   : > { %493 = vmatprep.mubr.f32.mxu0 %v1309_v7  ;;  %1148 = vmatpush1.bf16.msra.mxu0 %v1147_v51 }
  0x3b   : > { %1149 = vmatprep.subr.bf16.mxu0 %v1310_v14  ;;  %1196 = vmatpush1.bf16.msra.mxu1 %v1153_v59 }
  0x3c   : > { %1181 = vmatprep.subr.bf16.mxu1 %v1310_v14 }
  0x3d   : > { %1084 = vmatmul.mubr.msk.f32.gmra.mrb[18].mxu0 %vm278_vm0, %v235_v46 }
  0x3e   : > { %499 = vmatprep.mubr.f32.mxu0 %v1309_v7  ;;  %1151 = vmatpush1.bf16.msra.mxu0 %v1150_v55 }
  0x3f   : > { %1152 = vmatprep.subr.bf16.mxu0 %v1310_v14  ;;  %1197 = vmatpush1.bf16.msra.mxu1 %v1156_v63 }
  0x40   : > { %1182 = vmatprep.subr.bf16.mxu1 %v1310_v14 }
  0x41   : > { %1085 = vmatmul.mubr.msk.f32.gmra.mrb[20].mxu0 %vm278_vm0, %v236_v50 }
  0x42   : > { %505 = vmatprep.mubr.f32.mxu0 %v1309_v7  ;;  %1154 = vmatpush1.bf16.msra.mxu0 %v1153_v59 }
  0x43   : > { %1155 = vmatprep.subr.bf16.mxu0 %v1310_v14  ;;  %1198 = vmatpush1.bf16.msra.mxu1 %v1159_v3 }
  0x44   : > { %1183 = vmatprep.subr.bf16.mxu1 %v1310_v14 }
  0x45   : > { %1086 = vmatmul.mubr.msk.f32.gmra.mrb[22].mxu0 %vm278_vm0, %v237_v54 }
  0x46   : > { %511 = vmatprep.mubr.f32.mxu0 %v1309_v7  ;;  %1157 = vmatpush1.bf16.msra.mxu0 %v1156_v63 }
  0x47   : > { %1158 = vmatprep.subr.bf16.mxu0 %v1310_v14  ;;  %1199 = vmatpush1.bf16.msra.mxu1 %v1162_v8 }
  0x48   : > { %1184 = vmatprep.subr.bf16.mxu1 %v1310_v14 }
  0x49   : > { %1087 = vmatmul.mubr.msk.f32.gmra.mrb[24].mxu0 %vm278_vm0, %v238_v58 }
  0x4a   : > { %517 = vmatprep.mubr.f32.mxu0 %v1309_v7  ;;  %1160 = vmatpush1.bf16.msra.mxu0 %v1159_v3 }
  0x4b   : > { %1161 = vmatprep.subr.bf16.mxu0 %v1310_v14  ;;  %1200 = vmatpush1.bf16.msra.mxu1 %v1165_v18 }
  0x4c   : > { %1185 = vmatprep.subr.bf16.mxu1 %v1310_v14 }
  0x4d   : > { %1088 = vmatmul.mubr.msk.f32.gmra.mrb[26].mxu0 %vm278_vm0, %v239_v62 }
  0x4e   : > { %523 = vmatprep.mubr.f32.mxu0 %v1309_v7  ;;  %1163 = vmatpush1.bf16.msra.mxu0 %v1162_v8 }
  0x4f   : > { %1164 = vmatprep.subr.bf16.mxu0 %v1310_v14  ;;  %1201 = vmatpush1.bf16.msra.mxu1 %v1168_v22 }
  0x51   : > { %1089 = vmatmul.mubr.msk.f32.gmra.mrb[28].mxu0 %vm278_vm0, %v240_v2 }
  0x52   : > { %529 = vmatprep.mubr.f32.mxu0 %v1309_v7  ;;  %1166 = vmatpush1.bf16.msra.mxu0 %v1165_v18 }
  0x53   : > { %1167 = vmatprep.subr.bf16.mxu0 %v1310_v14  ;;  %v251_v14 = vld [vmem:[%s1421_s9 + $0xc8] sm:$0xff]  ;;  %s216_s9 = sand.u32 1, %s1299_s19  }
  0x54   : > { %s1072_s16 = sshll.u32 %s216_s9, 8  ;;  %s1802_s10 = scalar_lea.sflag [#allocation3], %s216_s9 }
  0x55   : > { %1090 = vmatmul.mubr.msk.f32.gmra.mrb[30].mxu0 %vm278_vm0, %v241_v6  ;;  %s1726_s25 = scalar_lea.vmem [#allocation2], %s1072_s16 }
  0x56   : > { %535 = vmatprep.mubr.f32.mxu0 %v1309_v7  ;;  %1169 = vmatpush1.bf16.msra.mxu0 %v1168_v22  ;;  %s1006_s30 = sshll.u32 %s1726_s25, 4  ;;  %s1796_s30 = int_to_ptr.vmem [resolvable:$true] %s1006_s30 }
  0x57   : > { %s1245_s22 = scalar_lea.vmem %s1796_s30, 4096  ;;  %p1252_p0 = scmp.lt.s32.totalorder %s1796_s30, %s1250_s12 }
  0x58   : > { %p1246_p11 = scmp.ne.s32.totalorder %s1796_s30, %s1245_s22  ;;  %p1253_p1 = scmp.lt.s32.totalorder %s1251_s13, %s1245_s22 }
  0x59   : > { %1091 = vmatmul.mubr.msk.f32.gmra.mrb[32].mxu0 %vm278_vm0, %v242_v9 }
  0x5a   : > { %541 = vmatprep.mubr.f32.mxu0 %v1309_v7  ;;  %p1247_p12 = pnand %p1246_p11, %p1382_p5  ;;  %p1254_p2 = por %p1253_p1, %p1252_p0 }
  0x5c   : > { %p1248_p13 = pneg %p1247_p12 }
  0x5d   : > { %1092 = vmatmul.mubr.msk.f32.gmra.mrb[34].mxu0 %vm278_vm0, %v243_v10 }
  0x5e   : > { %547 = vmatprep.mubr.f32.mxu0 %v1309_v7  ;;  %p1255_p3 = pnand %p1254_p2, %p1248_p13 }
  0x61   : > { %1093 = vmatmul.mubr.msk.f32.gmra.mrb[36].mxu0 %vm278_vm0, %v244_v11 }
  0x62   : > { %553 = vmatprep.mubr.f32.mxu0 %v1309_v7 }
  0x65   : > { %1094 = vmatmul.mubr.msk.f32.gmra.mrb[38].mxu0 %vm278_vm0, %v245_v12 }
  0x66   : > { %559 = vmatprep.mubr.f32.mxu0 %v1309_v7 }
  0x69   : > { %1095 = vmatmul.mubr.msk.f32.gmra.mrb[40].mxu0 %vm278_vm0, %v246_v13 }
  0x6a   : > { %565 = vmatprep.mubr.f32.mxu0 %v1309_v7 }
  0x6d   : > { %1096 = vmatmul.mubr.msk.f32.gmra.mrb[42].mxu0 %vm278_vm0, %v247_v17 }
  0x6e   : > { %571 = vmatprep.mubr.f32.mxu0 %v1309_v7 }
  0x71   : > { %1097 = vmatmul.mubr.msk.f32.gmra.mrb[44].mxu0 %vm278_vm0, %v248_v21 }
  0x72   : > { %577 = vmatprep.mubr.f32.mxu0 %v1309_v7 }
  0x75   : > { %1098 = vmatmul.mubr.msk.f32.gmra.mrb[46].mxu0 %vm278_vm0, %v249_v23 }
  0x76   : > { %583 = vmatprep.mubr.f32.mxu0 %v1309_v7 }
  0x79   : > { %1099 = vmatmul.mubr.msk.f32.gmra.mrb[48].mxu0 %vm278_vm0, %v250_v24 }
  0x7a   : > { %589 = vmatprep.mubr.f32.mxu0 %v1309_v7 }
  0x7d   : > { %1100 = vmatmul.mubr.msk.f32.gmra.mrb[50].mxu0 %vm278_vm0, %v251_v14 }
  0x7e   : > { %595 = vmatprep.mubr.f32.mxu0 %v1309_v7 }
  0x81   : > { %1101 = vmatmul.mubr.msk.f32.gmra.mrb[52].mxu0 %vm278_vm0, %v252_v25 }
  0x82   : > { %601 = vmatprep.mubr.f32.mxu0 %v1309_v7 }
  0x85   : > { %1102 = vmatmul.mubr.msk.f32.gmra.mrb[54].mxu0 %vm278_vm0, %v253_v26 }
  0x86   : > { %607 = vmatprep.mubr.f32.mxu0 %v1309_v7 }
  0x89   : > { %1103 = vmatmul.mubr.msk.f32.gmra.mrb[56].mxu0 %vm278_vm0, %v254_v27 }
  0x8a   : > { %613 = vmatprep.mubr.f32.mxu0 %v1309_v7 }
  0x8d   : > { %1104 = vmatmul.mubr.msk.f32.gmra.mrb[58].mxu0 %vm278_vm0, %v255_v28 }
  0x8e   : > { %619 = vmatprep.mubr.f32.mxu0 %v1309_v7 }
  0x91   : > { %1105 = vmatmul.mubr.msk.f32.gmra.mrb[60].mxu0 %vm278_vm0, %v256_v29 }
  0x92   : > { %625 = vmatprep.mubr.f32.mxu0 %v1309_v7 }
  0x95   : > { %1106 = vmatmul.mubr.msk.f32.gmra.mrb[62].mxu0 %vm278_vm0, %v257_v30 }
  0xec   : > { %v441_v38 = vpop.f32.mrb[0].mxu0 }
  0xed   : > { %v442_v39 = vadd.f32 %v441_v38, %v1649_v36  ;;  %v443_v40 = vpop.f32.mrb[1].mxu0 }
  0xee   : > { %v444_v7 = vadd.f32 %v443_v40, %v1651_v37 }
  0xef   : > { %v632_v43 = vmax.f32 %v442_v39, 0.0 }
  0xf0   : > { %v633_v41 = vmax.f32 %v444_v7, 0.0  ;;  %v447_v42 = vpop.f32.mrb[2].mxu0 }
  0xf1   : > { %v448_v44 = vadd.f32 %v447_v42, %v1649_v36  ;;  %v449_v45 = vpop.f32.mrb[3].mxu0 }
  0xf2   : > { %v450_v46 = vadd.f32 %v449_v45, %v1651_v37  ;;  %799 = vmatprep.mubr.f32.mxu0 %v633_v41 }
  0xf3   : > { %800 = vmatmul.mubr.f32.vlgmr.msra.gmra.mrb[64].mxu0 %v632_v43  ;;  %v634_v49 = vmax.f32 %v448_v44, 0.0 }
  0xf4   : > { %v635_v47 = vmax.f32 %v450_v46, 0.0  ;;  %v453_v48 = vpop.f32.mrb[4].mxu0 }
  0xf5   : > { %v454_v50 = vadd.f32 %v453_v48, %v1649_v36  ;;  %v455_v51 = vpop.f32.mrb[5].mxu0 }
  0xf6   : > { %v456_v52 = vadd.f32 %v455_v51, %v1651_v37  ;;  %804 = vmatprep.mubr.f32.mxu0 %v635_v47 }
  0xf7   : > { %805 = vmatmul.mubr.f32.gmra.mrb[66].mxu0 %v634_v49  ;;  %v636_v55 = vmax.f32 %v454_v50, 0.0 }
  0xf8   : > { %v637_v53 = vmax.f32 %v456_v52, 0.0  ;;  %v459_v54 = vpop.f32.mrb[6].mxu0 }
  0xf9   : > { %v460_v56 = vadd.f32 %v459_v54, %v1649_v36  ;;  %v461_v57 = vpop.f32.mrb[7].mxu0 }
  0xfa   : > { %v462_v58 = vadd.f32 %v461_v57, %v1651_v37  ;;  %809 = vmatprep.mubr.f32.mxu0 %v637_v53 }
  0xfb   : > { %810 = vmatmul.mubr.f32.gmra.mrb[68].mxu0 %v636_v55  ;;  %v638_v61 = vmax.f32 %v460_v56, 0.0 }
  0xfc   : > { %v639_v59 = vmax.f32 %v462_v58, 0.0  ;;  %v465_v60 = vpop.f32.mrb[8].mxu0 }
  0xfd   : > { %v466_v62 = vadd.f32 %v465_v60, %v1649_v36  ;;  %v467_v63 = vpop.f32.mrb[9].mxu0 }
  0xfe   : > { %v468_v0 = vadd.f32 %v467_v63, %v1651_v37  ;;  %814 = vmatprep.mubr.f32.mxu0 %v639_v59 }
  0xff   : > { %815 = vmatmul.mubr.f32.gmra.mrb[70].mxu0 %v638_v61  ;;  %v640_v3 = vmax.f32 %v466_v62, 0.0 }
 0x100   : > { %v641_v1 = vmax.f32 %v468_v0, 0.0  ;;  %v471_v2 = vpop.f32.mrb[10].mxu0 }
 0x101   : > { %v472_v4 = vadd.f32 %v471_v2, %v1649_v36  ;;  %v473_v5 = vpop.f32.mrb[11].mxu0 }
 0x102   : > { %v474_v6 = vadd.f32 %v473_v5, %v1651_v37  ;;  %819 = vmatprep.mubr.f32.mxu0 %v641_v1 }
 0x103   : > { %820 = vmatmul.mubr.f32.gmra.mrb[72].mxu0 %v640_v3  ;;  %v642_v10 = vmax.f32 %v472_v4, 0.0 }
 0x104   : > { %v643_v8 = vmax.f32 %v474_v6, 0.0  ;;  %v477_v9 = vpop.f32.mrb[12].mxu0 }
 0x105   : > { %v478_v11 = vadd.f32 %v477_v9, %v1649_v36  ;;  %v479_v12 = vpop.f32.mrb[13].mxu0 }
 0x106   : > { %v480_v13 = vadd.f32 %v479_v12, %v1651_v37  ;;  %824 = vmatprep.mubr.f32.mxu0 %v643_v8 }
 0x107   : > { %825 = vmatmul.mubr.f32.gmra.mrb[74].mxu0 %v642_v10  ;;  %v644_v17 = vmax.f32 %v478_v11, 0.0 }
 0x108   : > { %v645_v15 = vmax.f32 %v480_v13, 0.0  ;;  %v483_v16 = vpop.f32.mrb[14].mxu0 }
 0x109   : > { %v484_v18 = vadd.f32 %v483_v16, %v1649_v36  ;;  %v485_v19 = vpop.f32.mrb[15].mxu0 }
 0x10a   : > { %829 = vmatprep.mubr.f32.mxu0 %v645_v15  ;;  %v486_v20 = vadd.f32 %v485_v19, %v1651_v37 }
 0x10b   : > { %830 = vmatmul.mubr.f32.gmra.mrb[76].mxu0 %v644_v17  ;;  %v646_v23 = vmax.f32 %v484_v18, 0.0 }
 0x10c   : > { %v489_v21 = vpop.f32.mrb[16].mxu0  ;;  %v647_v22 = vmax.f32 %v486_v20, 0.0 }
 0x10d   : > { %v490_v24 = vadd.f32 %v489_v21, %v1649_v36  ;;  %v491_v14 = vpop.f32.mrb[17].mxu0 }
 0x10e   : > { %v492_v25 = vadd.f32 %v491_v14, %v1651_v37  ;;  %834 = vmatprep.mubr.f32.mxu1 %v647_v22 }
 0x10f   : > { %835 = vmatmul.mubr.f32.vlgmr.msra.gmra.mrb[0].mxu1 %v646_v23  ;;  %v648_v28 = vmax.f32 %v490_v24, 0.0 }
 0x110   : > { %v649_v26 = vmax.f32 %v492_v25, 0.0  ;;  %v495_v27 = vpop.f32.mrb[18].mxu0 }
 0x111   : > { %v496_v29 = vadd.f32 %v495_v27, %v1649_v36  ;;  %v497_v30 = vpop.f32.mrb[19].mxu0 }
 0x112   : > { %v498_v31 = vadd.f32 %v497_v30, %v1651_v37  ;;  %839 = vmatprep.mubr.f32.mxu1 %v649_v26 }
 0x113   : > { %840 = vmatmul.mubr.f32.gmra.mrb[2].mxu1 %v648_v28  ;;  %v650_v34 = vmax.f32 %v496_v29, 0.0 }
 0x114   : > { %v651_v32 = vmax.f32 %v498_v31, 0.0  ;;  %v501_v33 = vpop.f32.mrb[20].mxu0 }
 0x115   : > { %v502_v35 = vadd.f32 %v501_v33, %v1649_v36  ;;  %v503_v38 = vpop.f32.mrb[21].mxu0 }
 0x116   : > { %v504_v39 = vadd.f32 %v503_v38, %v1651_v37  ;;  %844 = vmatprep.mubr.f32.mxu1 %v651_v32 }
 0x117   : > { %845 = vmatmul.mubr.f32.gmra.mrb[4].mxu1 %v650_v34  ;;  %v652_v41 = vmax.f32 %v502_v35, 0.0 }
 0x118   : > { %v653_v40 = vmax.f32 %v504_v39, 0.0  ;;  %v507_v7 = vpop.f32.mrb[22].mxu0 }
 0x119   : > { %v508_v42 = vadd.f32 %v507_v7, %v1649_v36  ;;  %v509_v43 = vpop.f32.mrb[23].mxu0 }
 0x11a   : > { %v510_v44 = vadd.f32 %v509_v43, %v1651_v37  ;;  %849 = vmatprep.mubr.f32.mxu1 %v653_v40 }
 0x11b   : > { %850 = vmatmul.mubr.f32.gmra.mrb[6].mxu1 %v652_v41  ;;  %v654_v47 = vmax.f32 %v508_v42, 0.0 }
 0x11c   : > { %v655_v45 = vmax.f32 %v510_v44, 0.0  ;;  %v513_v46 = vpop.f32.mrb[24].mxu0 }
 0x11d   : > { %v514_v48 = vadd.f32 %v513_v46, %v1649_v36  ;;  %v515_v49 = vpop.f32.mrb[25].mxu0 }
 0x11e   : > { %v516_v50 = vadd.f32 %v515_v49, %v1651_v37  ;;  %854 = vmatprep.mubr.f32.mxu1 %v655_v45 }
 0x11f   : > { %855 = vmatmul.mubr.f32.gmra.mrb[8].mxu1 %v654_v47  ;;  %v656_v53 = vmax.f32 %v514_v48, 0.0 }
 0x120   : > { %v657_v51 = vmax.f32 %v516_v50, 0.0  ;;  %v519_v52 = vpop.f32.mrb[26].mxu0 }
 0x121   : > { %v520_v54 = vadd.f32 %v519_v52, %v1649_v36  ;;  %v521_v55 = vpop.f32.mrb[27].mxu0 }
 0x122   : > { %v522_v56 = vadd.f32 %v521_v55, %v1651_v37  ;;  %859 = vmatprep.mubr.f32.mxu1 %v657_v51 }
 0x123   : > { %860 = vmatmul.mubr.f32.gmra.mrb[10].mxu1 %v656_v53  ;;  %v658_v59 = vmax.f32 %v520_v54, 0.0 }
 0x124   : > { %v659_v57 = vmax.f32 %v522_v56, 0.0  ;;  %v525_v58 = vpop.f32.mrb[28].mxu0 }
 0x125   : > { %v526_v60 = vadd.f32 %v525_v58, %v1649_v36  ;;  %v527_v61 = vpop.f32.mrb[29].mxu0 }
 0x126   : > { %v528_v62 = vadd.f32 %v527_v61, %v1651_v37  ;;  %864 = vmatprep.mubr.f32.mxu1 %v659_v57 }
 0x127   : > { %865 = vmatmul.mubr.f32.gmra.mrb[12].mxu1 %v658_v59  ;;  %v660_v1 = vmax.f32 %v526_v60, 0.0 }
 0x128   : > { %v661_v63 = vmax.f32 %v528_v62, 0.0  ;;  %v531_v0 = vpop.f32.mrb[30].mxu0 }
 0x129   : > { %v532_v2 = vadd.f32 %v531_v0, %v1649_v36  ;;  %v533_v3 = vpop.f32.mrb[31].mxu0 }
 0x12a   : > { %v534_v4 = vadd.f32 %v533_v3, %v1651_v37  ;;  %869 = vmatprep.mubr.f32.mxu1 %v661_v63 }
 0x12b   : > { %870 = vmatmul.mubr.f32.gmra.mrb[14].mxu1 %v660_v1  ;;  %v662_v8 = vmax.f32 %v532_v2, 0.0 }
 0x12c   : > { %v663_v5 = vmax.f32 %v534_v4, 0.0  ;;  %v537_v6 = vpop.f32.mrb[32].mxu0 }
 0x12d   : > { %v538_v9 = vadd.f32 %v537_v6, %v1649_v36  ;;  %v539_v10 = vpop.f32.mrb[33].mxu0 }
 0x12e   : > { %v540_v11 = vadd.f32 %v539_v10, %v1651_v37  ;;  %874 = vmatprep.mubr.f32.mxu1 %v663_v5 }
 0x12f   : > { %875 = vmatmul.mubr.f32.gmra.mrb[16].mxu1 %v662_v8  ;;  %v664_v15 = vmax.f32 %v538_v9, 0.0 }
 0x130   : > { %v665_v12 = vmax.f32 %v540_v11, 0.0  ;;  %v543_v13 = vpop.f32.mrb[34].mxu0 }
 0x131   : > { %v544_v16 = vadd.f32 %v543_v13, %v1649_v36  ;;  %v545_v17 = vpop.f32.mrb[35].mxu0 }
 0x132   : > { %v546_v18 = vadd.f32 %v545_v17, %v1651_v37  ;;  %879 = vmatprep.mubr.f32.mxu1 %v665_v12 }
 0x133   : > { %880 = vmatmul.mubr.f32.gmra.mrb[18].mxu1 %v664_v15  ;;  %v666_v21 = vmax.f32 %v544_v16, 0.0 }
 0x134   : > { %v667_v19 = vmax.f32 %v546_v18, 0.0  ;;  %v549_v20 = vpop.f32.mrb[36].mxu0 }
 0x135   : > { %v550_v22 = vadd.f32 %v549_v20, %v1649_v36  ;;  %v551_v23 = vpop.f32.mrb[37].mxu0 }
 0x136   : > { %v552_v24 = vadd.f32 %v551_v23, %v1651_v37  ;;  %884 = vmatprep.mubr.f32.mxu1 %v667_v19 }
 0x137   : > { %885 = vmatmul.mubr.f32.gmra.mrb[20].mxu1 %v666_v21  ;;  %v668_v26 = vmax.f32 %v550_v22, 0.0 }
 0x138   : > { %v669_v14 = vmax.f32 %v552_v24, 0.0  ;;  %v555_v25 = vpop.f32.mrb[38].mxu0 }
 0x139   : > { %v556_v27 = vadd.f32 %v555_v25, %v1649_v36  ;;  %v557_v28 = vpop.f32.mrb[39].mxu0 }
 0x13a   : > { %v558_v29 = vadd.f32 %v557_v28, %v1651_v37  ;;  %889 = vmatprep.mubr.f32.mxu1 %v669_v14 }
 0x13b   : > { %890 = vmatmul.mubr.f32.gmra.mrb[22].mxu1 %v668_v26  ;;  %v670_v32 = vmax.f32 %v556_v27, 0.0 }
 0x13c   : > { %v671_v30 = vmax.f32 %v558_v29, 0.0  ;;  %v561_v31 = vpop.f32.mrb[40].mxu0 }
 0x13d   : > { %v562_v33 = vadd.f32 %v561_v31, %v1649_v36  ;;  %v563_v34 = vpop.f32.mrb[41].mxu0 }
 0x13e   : > { %v564_v35 = vadd.f32 %v563_v34, %v1651_v37  ;;  %894 = vmatprep.mubr.f32.mxu1 %v671_v30 }
 0x13f   : > { %895 = vmatmul.mubr.f32.gmra.mrb[24].mxu1 %v670_v32  ;;  %v672_v40 = vmax.f32 %v562_v33, 0.0 }
 0x140   : > { %v673_v38 = vmax.f32 %v564_v35, 0.0  ;;  %v567_v39 = vpop.f32.mrb[42].mxu0 }
 0x141   : > { %v568_v7 = vadd.f32 %v567_v39, %v1649_v36  ;;  %v569_v41 = vpop.f32.mrb[43].mxu0 }
 0x142   : > { %v570_v42 = vadd.f32 %v569_v41, %v1651_v37  ;;  %899 = vmatprep.mubr.f32.mxu1 %v673_v38 }
 0x143   : > { %900 = vmatmul.mubr.f32.gmra.mrb[26].mxu1 %v672_v40  ;;  %v674_v45 = vmax.f32 %v568_v7, 0.0 }
 0x144   : > { %v675_v43 = vmax.f32 %v570_v42, 0.0  ;;  %v573_v44 = vpop.f32.mrb[44].mxu0 }
 0x145   : > { %v574_v46 = vadd.f32 %v573_v44, %v1649_v36  ;;  %v575_v47 = vpop.f32.mrb[45].mxu0 }
 0x146   : > { %v576_v48 = vadd.f32 %v575_v47, %v1651_v37  ;;  %904 = vmatprep.mubr.f32.mxu1 %v675_v43  ;;  %v1723_v43 = vld [vmem:[%s1847_s4] ss:$0 sm:$0xff] }
 0x147   : > { %905 = vmatmul.mubr.f32.gmra.mrb[28].mxu1 %v674_v45  ;;  %v676_v51 = vmax.f32 %v574_v46, 0.0 }
 0x148   : > { %v677_v49 = vmax.f32 %v576_v48, 0.0  ;;  %v579_v50 = vpop.f32.mrb[46].mxu0 }
 0x149   : > { %v580_v52 = vadd.f32 %v579_v50, %v1649_v36  ;;  %v581_v53 = vpop.f32.mrb[47].mxu0 }
 0x14a   : > { %v582_v54 = vadd.f32 %v581_v53, %v1651_v37  ;;  %909 = vmatprep.mubr.f32.mxu1 %v677_v49 }
 0x14b   : > { %910 = vmatmul.mubr.f32.gmra.mrb[30].mxu1 %v676_v51  ;;  %v678_v57 = vmax.f32 %v580_v52, 0.0 }
 0x14c   : > { %v679_v55 = vmax.f32 %v582_v54, 0.0  ;;  %v585_v56 = vpop.f32.mrb[48].mxu0 }
 0x14d   : > { %v586_v58 = vadd.f32 %v585_v56, %v1649_v36  ;;  %v587_v59 = vpop.f32.mrb[49].mxu0 }
 0x14e   : > { %v588_v60 = vadd.f32 %v587_v59, %v1651_v37  ;;  %914 = vmatprep.mubr.f32.mxu1 %v679_v55 }
 0x14f   : > { %915 = vmatmul.mubr.f32.gmra.mrb[32].mxu1 %v678_v57  ;;  %v680_v63 = vmax.f32 %v586_v58, 0.0 }
 0x150   : > { %v681_v61 = vmax.f32 %v588_v60, 0.0  ;;  %v591_v62 = vpop.f32.mrb[50].mxu0 }
 0x151   : > { %v592_v0 = vadd.f32 %v591_v62, %v1649_v36  ;;  %v593_v1 = vpop.f32.mrb[51].mxu0 }
 0x152   : > { %v594_v2 = vadd.f32 %v593_v1, %v1651_v37  ;;  %919 = vmatprep.mubr.f32.mxu1 %v681_v61 }
 0x153   : > { %920 = vmatmul.mubr.f32.gmra.mrb[34].mxu1 %v680_v63  ;;  %v682_v5 = vmax.f32 %v592_v0, 0.0 }
 0x154   : > { %v683_v3 = vmax.f32 %v594_v2, 0.0  ;;  %v597_v4 = vpop.f32.mrb[52].mxu0 }
 0x155   : > { %v598_v6 = vadd.f32 %v597_v4, %v1649_v36  ;;  %v599_v8 = vpop.f32.mrb[53].mxu0 }
 0x156   : > { %v600_v9 = vadd.f32 %v599_v8, %v1651_v37  ;;  %924 = vmatprep.mubr.f32.mxu1 %v683_v3 }
 0x157   : > { %925 = vmatmul.mubr.f32.gmra.mrb[36].mxu1 %v682_v5  ;;  %v684_v12 = vmax.f32 %v598_v6, 0.0 }
 0x158   : > { %v685_v10 = vmax.f32 %v600_v9, 0.0  ;;  %v603_v11 = vpop.f32.mrb[54].mxu0 }
 0x159   : > { %v604_v13 = vadd.f32 %v603_v11, %v1649_v36  ;;  %v605_v15 = vpop.f32.mrb[55].mxu0 }
 0x15a   : > { %v606_v16 = vadd.f32 %v605_v15, %v1651_v37  ;;  %929 = vmatprep.mubr.f32.mxu1 %v685_v10 }
 0x15b   : > { %930 = vmatmul.mubr.f32.gmra.mrb[38].mxu1 %v684_v12  ;;  %v686_v19 = vmax.f32 %v604_v13, 0.0 }
 0x15c   : > { %v687_v17 = vmax.f32 %v606_v16, 0.0  ;;  %v609_v18 = vpop.f32.mrb[56].mxu0 }
 0x15d   : > { %v610_v20 = vadd.f32 %v609_v18, %v1649_v36  ;;  %v611_v21 = vpop.f32.mrb[57].mxu0 }
 0x15e   : > { %v612_v22 = vadd.f32 %v611_v21, %v1651_v37  ;;  %934 = vmatprep.mubr.f32.mxu1 %v687_v17 }
 0x15f   : > { %935 = vmatmul.mubr.f32.gmra.mrb[40].mxu1 %v686_v19  ;;  %v688_v14 = vmax.f32 %v610_v20, 0.0 }
 0x160   : > { %v689_v23 = vmax.f32 %v612_v22, 0.0  ;;  %v615_v24 = vpop.f32.mrb[58].mxu0 }
 0x161   : > { %v616_v25 = vadd.f32 %v615_v24, %v1649_v36  ;;  %v617_v26 = vpop.f32.mrb[59].mxu0 }
 0x162   : > { %v618_v27 = vadd.f32 %v617_v26, %v1651_v37  ;;  %939 = vmatprep.mubr.f32.mxu1 %v689_v23 }
 0x163   : > { %940 = vmatmul.mubr.f32.gmra.mrb[42].mxu1 %v688_v14  ;;  %v690_v30 = vmax.f32 %v616_v25, 0.0 }
 0x164   : > { %v691_v28 = vmax.f32 %v618_v27, 0.0  ;;  %v621_v29 = vpop.f32.mrb[60].mxu0 }
 0x165   : > { %v622_v31 = vadd.f32 %v621_v29, %v1649_v36  ;;  %v623_v32 = vpop.f32.mrb[61].mxu0 }
 0x166   : > { %v624_v33 = vadd.f32 %v623_v32, %v1651_v37  ;;  %944 = vmatprep.mubr.f32.mxu1 %v691_v28 }
 0x167   : > { %945 = vmatmul.mubr.f32.gmra.mrb[44].mxu1 %v690_v30  ;;  %v692_v38 = vmax.f32 %v622_v31, 0.0 }
 0x168   : > { %v693_v34 = vmax.f32 %v624_v33, 0.0  ;;  %v627_v35 = vpop.f32.mrb[62].mxu0 }
 0x169   : > { %v628_v39 = vadd.f32 %v627_v35, %v1649_v36  ;;  %v629_v40 = vpop.f32.mrb[63].mxu0 }
 0x16a   : > { %v630_v7 = vadd.f32 %v629_v40, %v1651_v37  ;;  %949 = vmatprep.mubr.f32.mxu1 %v693_v34 }
 0x16b   : > { %950 = vmatmul.mubr.f32.gmra.mrb[46].mxu1 %v692_v38  ;;  %v694_v42 = vmax.f32 %v628_v39, 0.0 }
 0x16c   : > { %v695_v41 = vmax.f32 %v630_v7, 0.0 }
 0x16e   : > { %954 = vmatprep.mubr.f32.mxu1 %v695_v41 }
 0x16f   : > { %955 = vmatmul.mubr.f32.gmra.mrb[48].mxu1 %v694_v42 }
 0x1c6   : > { %v801_v44 = vpop.f32.mrb[64].mxu0 }
 0x1c7   : > { %v802_v36 = vadd.f32 %v1723_v43, %v801_v44  ;;  %v803_v45 = vpop.f32.mrb[65].mxu0 }
 0x1c9   : > { %960 = vst [vmem:[%s1726_s25] sm:$0xff] %v802_v36 }
 0x1ca   : > { %v806_v37 = vpop.f32.mrb[66].mxu0 }
 0x1cb   : > { %v807_v46 = vadd.f32 %v1723_v43, %v806_v37  ;;  %v808_v47 = vpop.f32.mrb[67].mxu0 }
 0x1cd   : > { %961 = vst [vmem:[%s1726_s25 + $0x8] sm:$0xff] %v807_v46 }
 0x1ce   : > { %v811_v48 = vpop.f32.mrb[68].mxu0 }
 0x1cf   : > { %v812_v49 = vadd.f32 %v1723_v43, %v811_v48  ;;  %v813_v50 = vpop.f32.mrb[69].mxu0 }
 0x1d1   : > { %962 = vst [vmem:[%s1726_s25 + $0x10] sm:$0xff] %v812_v49 }
 0x1d2   : > { %v816_v51 = vpop.f32.mrb[70].mxu0 }
 0x1d3   : > { %v817_v52 = vadd.f32 %v1723_v43, %v816_v51  ;;  %v818_v53 = vpop.f32.mrb[71].mxu0 }
 0x1d5   : > { %963 = vst [vmem:[%s1726_s25 + $0x18] sm:$0xff] %v817_v52 }
 0x1d6   : > { %v821_v54 = vpop.f32.mrb[72].mxu0 }
 0x1d7   : > { %v822_v55 = vadd.f32 %v1723_v43, %v821_v54  ;;  %v823_v56 = vpop.f32.mrb[73].mxu0 }
 0x1d9   : > { %964 = vst [vmem:[%s1726_s25 + $0x20] sm:$0xff] %v822_v55 }
 0x1da   : > { %v826_v57 = vpop.f32.mrb[74].mxu0 }
 0x1db   : > { %v827_v58 = vadd.f32 %v1723_v43, %v826_v57  ;;  %v828_v59 = vpop.f32.mrb[75].mxu0 }
 0x1dd   : > { %965 = vst [vmem:[%s1726_s25 + $0x28] sm:$0xff] %v827_v58 }
 0x1de   : > { %v831_v60 = vpop.f32.mrb[76].mxu0 }
 0x1df   : > { %v832_v61 = vadd.f32 %v1723_v43, %v831_v60  ;;  %v833_v62 = vpop.f32.mrb[77].mxu0 }
 0x1e1   : > { %966 = vst [vmem:[%s1726_s25 + $0x30] sm:$0xff] %v832_v61 }
 0x1e2   : > { %v836_v63 = vpop.f32.mrb[0].mxu1 }
 0x1e3   : > { %v837_v0 = vadd.f32 %v1723_v43, %v836_v63  ;;  %v838_v1 = vpop.f32.mrb[1].mxu1 }
 0x1e5   : > { %967 = vst [vmem:[%s1726_s25 + $0x38] sm:$0xff] %v837_v0 }
 0x1e6   : > { %v841_v2 = vpop.f32.mrb[2].mxu1 }
 0x1e7   : > { %v842_v3 = vadd.f32 %v1723_v43, %v841_v2  ;;  %v843_v4 = vpop.f32.mrb[3].mxu1 }
 0x1e9   : > { %968 = vst [vmem:[%s1726_s25 + $0x40] sm:$0xff] %v842_v3 }
 0x1ea   : > { %v846_v5 = vpop.f32.mrb[4].mxu1 }
 0x1eb   : > { %v847_v6 = vadd.f32 %v1723_v43, %v846_v5  ;;  %v848_v8 = vpop.f32.mrb[5].mxu1 }
 0x1ed   : > { %969 = vst [vmem:[%s1726_s25 + $0x48] sm:$0xff] %v847_v6 }
 0x1ee   : > { %v851_v9 = vpop.f32.mrb[6].mxu1 }
 0x1ef   : > { %v852_v10 = vadd.f32 %v1723_v43, %v851_v9  ;;  %v853_v11 = vpop.f32.mrb[7].mxu1 }
 0x1f1   : > { %970 = vst [vmem:[%s1726_s25 + $0x50] sm:$0xff] %v852_v10 }
 0x1f2   : > { %v856_v12 = vpop.f32.mrb[8].mxu1 }
 0x1f3   : > { %v857_v13 = vadd.f32 %v1723_v43, %v856_v12  ;;  %v858_v15 = vpop.f32.mrb[9].mxu1 }
 0x1f5   : > { %971 = vst [vmem:[%s1726_s25 + $0x58] sm:$0xff] %v857_v13 }
 0x1f6   : > { %v861_v16 = vpop.f32.mrb[10].mxu1 }
 0x1f7   : > { %v862_v17 = vadd.f32 %v1723_v43, %v861_v16  ;;  %v863_v18 = vpop.f32.mrb[11].mxu1 }
 0x1f9   : > { %972 = vst [vmem:[%s1726_s25 + $0x60] sm:$0xff] %v862_v17 }
 0x1fa   : > { %v866_v19 = vpop.f32.mrb[12].mxu1 }
 0x1fb   : > { %v867_v20 = vadd.f32 %v1723_v43, %v866_v19  ;;  %v868_v21 = vpop.f32.mrb[13].mxu1 }
 0x1fd   : > { %973 = vst [vmem:[%s1726_s25 + $0x68] sm:$0xff] %v867_v20 }
 0x1fe   : > { %v871_v22 = vpop.f32.mrb[14].mxu1 }
 0x1ff   : > { %v872_v23 = vadd.f32 %v1723_v43, %v871_v22  ;;  %v873_v24 = vpop.f32.mrb[15].mxu1 }
 0x201   : > { %974 = vst [vmem:[%s1726_s25 + $0x70] sm:$0xff] %v872_v23 }
 0x202   : > { %v876_v14 = vpop.f32.mrb[16].mxu1 }
 0x203   : > { %v877_v25 = vadd.f32 %v1723_v43, %v876_v14  ;;  %v878_v26 = vpop.f32.mrb[17].mxu1 }
 0x205   : > { %975 = vst [vmem:[%s1726_s25 + $0x78] sm:$0xff] %v877_v25 }
 0x206   : > { %v881_v27 = vpop.f32.mrb[18].mxu1 }
 0x207   : > { %v882_v28 = vadd.f32 %v1723_v43, %v881_v27  ;;  %v883_v29 = vpop.f32.mrb[19].mxu1 }
 0x209   : > { %976 = vst [vmem:[%s1726_s25 + $0x80] sm:$0xff] %v882_v28 }
 0x20a   : > { %v886_v30 = vpop.f32.mrb[20].mxu1 }
 0x20b   : > { %v887_v31 = vadd.f32 %v1723_v43, %v886_v30  ;;  %v888_v32 = vpop.f32.mrb[21].mxu1 }
 0x20d   : > { %977 = vst [vmem:[%s1726_s25 + $0x88] sm:$0xff] %v887_v31 }
 0x20e   : > { %v891_v33 = vpop.f32.mrb[22].mxu1 }
 0x20f   : > { %v892_v34 = vadd.f32 %v1723_v43, %v891_v33  ;;  %v893_v35 = vpop.f32.mrb[23].mxu1 }
 0x211   : > { %978 = vst [vmem:[%s1726_s25 + $0x90] sm:$0xff] %v892_v34 }
 0x212   : > { %v896_v38 = vpop.f32.mrb[24].mxu1 }
 0x213   : > { %v897_v39 = vadd.f32 %v1723_v43, %v896_v38  ;;  %v898_v40 = vpop.f32.mrb[25].mxu1 }
 0x215   : > { %979 = vst [vmem:[%s1726_s25 + $0x98] sm:$0xff] %v897_v39 }
 0x216   : > { %v901_v7 = vpop.f32.mrb[26].mxu1 }
 0x217   : > { %v902_v41 = vadd.f32 %v1723_v43, %v901_v7  ;;  %v903_v42 = vpop.f32.mrb[27].mxu1 }
 0x219   : > { %980 = vst [vmem:[%s1726_s25 + $0xa0] sm:$0xff] %v902_v41 }
 0x21a   : > { %v906_v44 = vpop.f32.mrb[28].mxu1 }
 0x21b   : > { %v907_v36 = vadd.f32 %v1723_v43, %v906_v44  ;;  %v908_v45 = vpop.f32.mrb[29].mxu1 }
 0x21d   : > { %981 = vst [vmem:[%s1726_s25 + $0xa8] sm:$0xff] %v907_v36 }
 0x21e   : > { %v911_v37 = vpop.f32.mrb[30].mxu1 }
 0x21f   : > { %v912_v46 = vadd.f32 %v1723_v43, %v911_v37  ;;  %v913_v47 = vpop.f32.mrb[31].mxu1 }
 0x221   : > { %982 = vst [vmem:[%s1726_s25 + $0xb0] sm:$0xff] %v912_v46 }
 0x222   : > { %v916_v48 = vpop.f32.mrb[32].mxu1 }
 0x223   : > { %v917_v49 = vadd.f32 %v1723_v43, %v916_v48  ;;  %v918_v50 = vpop.f32.mrb[33].mxu1 }
 0x225   : > { %983 = vst [vmem:[%s1726_s25 + $0xb8] sm:$0xff] %v917_v49 }
 0x226   : > { %v921_v51 = vpop.f32.mrb[34].mxu1 }
 0x227   : > { %v922_v52 = vadd.f32 %v1723_v43, %v921_v51  ;;  %v923_v53 = vpop.f32.mrb[35].mxu1 }
 0x229   : > { %984 = vst [vmem:[%s1726_s25 + $0xc0] sm:$0xff] %v922_v52 }
 0x22a   : > { %v926_v54 = vpop.f32.mrb[36].mxu1 }
 0x22b   : > { %v927_v55 = vadd.f32 %v1723_v43, %v926_v54  ;;  %v928_v56 = vpop.f32.mrb[37].mxu1 }
 0x22d   : > { %985 = vst [vmem:[%s1726_s25 + $0xc8] sm:$0xff] %v927_v55 }
 0x22e   : > { %v931_v57 = vpop.f32.mrb[38].mxu1 }
 0x22f   : > { %v932_v58 = vadd.f32 %v1723_v43, %v931_v57  ;;  %v933_v59 = vpop.f32.mrb[39].mxu1 }
 0x231   : > { %986 = vst [vmem:[%s1726_s25 + $0xd0] sm:$0xff] %v932_v58 }
 0x232   : > { %v936_v60 = vpop.f32.mrb[40].mxu1 }
 0x233   : > { %v937_v61 = vadd.f32 %v1723_v43, %v936_v60  ;;  %v938_v62 = vpop.f32.mrb[41].mxu1 }
 0x235   : > { %987 = vst [vmem:[%s1726_s25 + $0xd8] sm:$0xff] %v937_v61 }
 0x236   : > { %v941_v63 = vpop.f32.mrb[42].mxu1 }
 0x237   : > { %v942_v0 = vadd.f32 %v1723_v43, %v941_v63  ;;  %v943_v1 = vpop.f32.mrb[43].mxu1 }
 0x239   : > { %988 = vst [vmem:[%s1726_s25 + $0xe0] sm:$0xff] %v942_v0 }
 0x23a   : > { %v946_v2 = vpop.f32.mrb[44].mxu1 }
 0x23b   : > { %v947_v3 = vadd.f32 %v1723_v43, %v946_v2  ;;  %v948_v4 = vpop.f32.mrb[45].mxu1 }
 0x23d   : > { %989 = vst [vmem:[%s1726_s25 + $0xe8] sm:$0xff] %v947_v3 }
 0x23e   : > { %v951_v5 = vpop.f32.mrb[46].mxu1 }
 0x23f   : > { %v952_v6 = vadd.f32 %v1723_v43, %v951_v5  ;;  %v953_v8 = vpop.f32.mrb[47].mxu1 }
 0x241   : > { %990 = vst [vmem:[%s1726_s25 + $0xf0] sm:$0xff] %v952_v6 }
 0x242   : > { %v956_v9 = vpop.f32.mrb[48].mxu1 }
 0x243   : > { %v957_v10 = vadd.f32 %v1723_v43, %v956_v9  ;;  %v958_v11 = vpop.f32.mrb[49].mxu1 }
 0x245   : > { %991 = vst [vmem:[%s1726_s25 + $0xf8] sm:$0xff] %v957_v10 }
 0x246   : > { %1258 = shalt.err (!%p1255_p3)
}
 0x247   : > { %s1259_s14 = scalar_lea.hbm %s1794_s8, 4096  ;;  %s1263_s16 = scalar_lea.hbm %s1848_s5, 8192 }
 0x248   : > { %p1260_p4 = scmp.ne.s32.totalorder %s1794_s8, %s1259_s14  ;;  %p1264_p9 = scmp.lt.u32.totalorder %s1794_s8, %s1848_s5 }
 0x249   : > { %p1265_p10 = scmp.lt.u32.totalorder %s1263_s16, %s1259_s14  ;;  %p1267_p12 = scmp.lt.u32.totalorder %s1259_s14, %s1794_s8 }
 0x24a   : > { %p1261_p7 = pnand %p1260_p4, %p1382_p5 }
 0x24b   : > { %p1266_p11 = por %p1265_p10, %p1264_p9 }
 0x24c   : > { %p1262_p8 = pneg %p1261_p7 }
 0x24d   : > { %p1268_p13 = por %p1267_p12, %p1266_p11 }
 0x24f   : > { %p1269_p0 = pnand %p1268_p13, %p1262_p8 }
 0x251   : > { %1272 = shalt.err (!%p1269_p0)
}
 0x252   : > { %s1312_s25 = smov 128   ;;  %s1313_s26 = smov 8  }
 0x253   : > { %1202 = dma.vmem_to_hbm [thread:$0]  (%p1382_p5), %s1796_s30, 4096, %s1794_s8, %s1802_s10, %s1312_s25, %s1312_s25, %s1313_s26  }
 0x254 PF: > { %p1208_p1 = scmp.ge.s32.totalorder %s1307_s21, 2  ;;  %s1021_s6 = sand.u32 1, %s1295_s18  }
 0x255   : > { %s1022_s7 = scalar_lea.sflag [#allocation3], %s1021_s6 }
 0x256   : > { %p1205_p2 = pnand %p1208_p1, %p1386_p6 }
 0x258   : > { %1290 = dma.done.wait (!%p1205_p2), %s1022_s7, 4096  }
 0x259   : > { %1292 = vsyncadd (!%p1205_p2), %s1022_s7, 4294963200  ;;  %p15_p3 = scmp.ge.s32.totalorder %s1369_s24, 4   ;;  %s1851_s18 = smov %s1299_s19 }
 0x25a   : > { %s1852_s19 = smov %s1303_s20  ;;  %s1853_s20 = smov %s1380_s27 }
 0x25b   : > { %s1854_s21 = smov %s1369_s24  ;;  %17 = sbr.rel (!%p15_p3) target bundleno = 3 (0x3), region = 75 }
 0x262   :  { %1027 = vsyncpa [#allocation3], 1 }
 0x263   :  { %1029 = vsyncpa [#allocation3 + $0x1], 1 }

</bundles_post_ra>
